<compile_context>
chip_gen: v7x
topology: tpu7x:2x2x1
jax: 0.10.0
libtpu: 0.0.40
codegen_flags: <defaults>
</compile_context>

<pallas_src>
import jax
import jax.numpy as jnp
from jax.experimental import pallas as pl
from jax.experimental.pallas import tpu as pltpu


def _round_up(x, m):
    return ((x + m - 1) // m) * m


def _mlp_head_kernel(x_ref, w1_ref, b1_ref, w2_ref, b2_ref, o_ref):
    # x: [TB, H_pad] bf16 (DMA'd at half width), W1: [H_pad, HID] bf16.
    # Single MXU pass over the full hidden dim, f32 accumulation.
    h = jnp.dot(x_ref[...], w1_ref[...], preferred_element_type=jnp.float32)
    h = jnp.maximum(h + b1_ref[...], 0.0)                     # bias + ReLU (f32 VPU)
    # Dropout(p, inplace=True) is identity at inference -> no-op here.
    # Second linear (out_dim = 1): VPU multiply + XLU lane reduce instead of a
    # nearly-empty MXU pass.
    acc = jnp.sum(h * w2_ref[...], axis=-1, keepdims=True) + b2_ref[...]   # [TB, 1]
    # Lane-dense store: batch on lanes -> unmasked vst (no lane-width-1 writes).
    o_ref[...] = acc.reshape(o_ref.shape).astype(o_ref.dtype)              # [1, TB]


def value_prediction_head(pooled_output, params, targets=None):
    """JAX wrapper mirroring ValuePredictionHead.forward (inference)."""
    w1, b1, w2_row, b2 = params          # w1: [H, 512] bf16, w2_row: [1, 512] f32
    B, H = pooled_output.shape
    HID = w1.shape[1]                    # 512

    # --- Batch tile selection (generation-aware) ---------------------------
    if B >= 1024:
        TB = 512                               # big tiles, grid >= 2 everywhere
    elif B >= 256:
        TB = _round_up(-(-B // 2), 128)        # 2 grid steps -> both v7x TCs busy
    else:
        TB = _round_up(B, 16)                  # single small tile, grid = 1
    B_pad = _round_up(B, TB)
    H_pad = _round_up(H, 128)                  # lane-align the contraction dim

    # bf16 cast fused with the padding copy: halves the dominant HBM stream.
    x = pooled_output.astype(jnp.bfloat16)
    if (B_pad, H_pad) != (B, H):
        x = jnp.pad(x, ((0, B_pad - B), (0, H_pad - H)))
    w1p = w1 if H_pad == H else jnp.pad(w1, ((0, H_pad - H), (0, 0)))

    grid = (B_pad // TB,)

    # --- VMEM budget (explicit, with headroom; capped at v7x physical) -----
    vmem_need = (2 * TB * H_pad * 2            # double-buffered bf16 x tiles
                 + 2 * H_pad * HID * 2         # resident bf16 W1 (worst-case 2 bufs)
                 + 4 * HID * 4 + 8             # b1 + W2 row (+ b2), f32, 2 bufs
                 + TB * HID * 4                # f32 hidden tile
                 + 2 * TB * 4)                 # double-buffered output row
    vmem_limit = int(min(64 * 1024 * 1024,
                         max(2 * vmem_need, 16 * 1024 * 1024)))

    # --- Scheduler hint for the surrounding graph --------------------------
    flops = 2 * B_pad * H_pad * HID + 2 * B_pad * HID
    bytes_accessed = (x.size * x.dtype.itemsize            # bf16 activations
                      + w1p.size * w1p.dtype.itemsize      # bf16 W1
                      + (b1.size + w2_row.size + b2.size) * 4
                      + B_pad * 4)                         # f32 output

    out_row = pl.pallas_call(
        _mlp_head_kernel,
        out_shape=jax.ShapeDtypeStruct((1, B_pad), jnp.float32),   # f32 pinned
        grid=grid,
        in_specs=[
            pl.BlockSpec((TB, H_pad), lambda i: (i, 0)),    # x: tiled over batch
            pl.BlockSpec((H_pad, HID), lambda i: (0, 0)),   # W1: VMEM-resident
            pl.BlockSpec((1, HID), lambda i: (0, 0)),       # b1
            pl.BlockSpec((1, HID), lambda i: (0, 0)),       # W2 row
            pl.BlockSpec((1, 1), lambda i: (0, 0)),         # b2
        ],
        out_specs=pl.BlockSpec((1, TB), lambda i: (0, i)),  # lane-dense output
        compiler_params=pltpu.CompilerParams(
            dimension_semantics=("parallel",),
            vmem_limit_bytes=vmem_limit),
        cost_estimate=pl.CostEstimate(
            flops=flops, transcendentals=0, bytes_accessed=int(bytes_accessed)),
    )(x, w1p, b1, w2_row, b2)

    value_pred = out_row.reshape(B_pad, 1)[:B]              # [B, 1] f32

    outputs = (value_pred,)
    if targets is not None:
        # MSELoss (mean reduction) — tiny scalar reduction, plain-JAX glue.
        loss = jnp.mean((value_pred - targets) ** 2)
        outputs = (loss,) + outputs
    return outputs


def init_params(key, hidden_size, hid_dim=512, out_dim=1, dtype=jnp.float32):
    """Deterministic synthetic parameters; weight_norm(dim=None) folded here."""
    k1, k2, k3, k4, k5, k6 = jax.random.split(key, 6)

    # Layer 1: torch Linear(in=H, out=512) weight is [512, H]
    v1 = jax.random.normal(k1, (hid_dim, hidden_size), dtype) * 0.05
    g1 = jnp.abs(jax.random.normal(k2, (), dtype)) + 1.0          # scalar g (dim=None)
    w1_torch = g1 * v1 / jnp.linalg.norm(v1)                      # Frobenius norm
    b1 = jax.random.normal(k3, (hid_dim,), dtype) * 0.05

    # Layer 2: torch Linear(in=512, out=1) weight is [1, 512]
    v2 = jax.random.normal(k4, (out_dim, hid_dim), dtype) * 0.05
    g2 = jnp.abs(jax.random.normal(k5, (), dtype)) + 1.0
    w2_torch = g2 * v2 / jnp.linalg.norm(v2)
    b2 = jax.random.normal(k6, (out_dim,), dtype) * 0.05

    # Kernel layout: W1 transposed + bf16 (MXU operand); W2 kept as an f32 row
    # (used on the VPU); biases 2-D f32.
    w1 = w1_torch.T.astype(jnp.bfloat16)          # [H, 512] bf16
    w2_row = w2_torch.astype(dtype)               # [1, 512] f32
    return (w1, b1.reshape(1, hid_dim), w2_row, b2.reshape(1, out_dim))


if __name__ == "__main__":
    key = jax.random.PRNGKey(0)
    B, H = 4, 32

    kx, kp, kt = jax.random.split(key, 3)
    pooled_output = jax.random.normal(kx, (B, H), jnp.float32)
    params = init_params(kp, H)
    targets = jax.random.normal(kt, (B, 1), jnp.float32)

    # Path without targets (default): returns (value_pred,)
    (value_pred,) = value_prediction_head(pooled_output, params)
    value_pred = jax.block_until_ready(value_pred)

    # Path with targets: returns (loss, value_pred)
    loss, value_pred2 = value_prediction_head(pooled_output, params, targets)
    jax.block_until_ready(loss)
    jax.block_until_ready(value_pred2)

    # Cross-check kernel against a plain-JAX reference of the same math
    # (bf16 matmul operands, f32 accumulation, row-reduce second layer).
    # NOTE: bf16 x / bf16 W1 intentionally deviates from f32 torch; 1e-3 tol.
    w1, b1, w2_row, b2 = params
    xb = pooled_output.astype(jnp.bfloat16)
    h_ref = jnp.maximum(
        jnp.dot(xb, w1, preferred_element_type=jnp.float32) + b1, 0.0)
    ref = jnp.sum(h_ref * w2_row, axis=-1, keepdims=True) + b2

    assert value_pred.shape == (B, 1)
    assert value_pred.dtype == jnp.float32
    assert jnp.allclose(value_pred, ref, atol=1e-3, rtol=1e-3)
    assert jnp.allclose(value_pred2, value_pred)
    assert jnp.isfinite(loss)

    print("KERNEL_OK")
</pallas_src>

<mosaic_0001>
module attributes {stable_mosaic.version = 11 : i64} {
  func.func @_mlp_head_kernel(%arg0: i32, %arg1: memref<16x128xbf16, #tpu.memory_space<vmem>>, %arg2: memref<128x512xbf16, #tpu.memory_space<vmem>>, %arg3: memref<1x512xf32, #tpu.memory_space<vmem>>, %arg4: memref<1x512xf32, #tpu.memory_space<vmem>>, %arg5: memref<1x1xf32, #tpu.memory_space<vmem>>, %arg6: memref<1x16xf32, #tpu.memory_space<vmem>>) attributes {dimension_semantics = [#tpu.dimension_semantics<parallel>], iteration_bounds = array<i64: 1>, scalar_prefetch = 0 : i64, scratch_operands = 0 : i64, tpu.core_type = #tpu.core_type<tc>, window_params = [{transform_indices = @transform_0, window_bounds = array<i64: 16, 128>}, {pipeline_mode = #tpu.pipeline_mode<synchronous>, transform_indices = @transform_1, window_bounds = array<i64: 128, 512>}, {pipeline_mode = #tpu.pipeline_mode<synchronous>, transform_indices = @transform_2, window_bounds = array<i64: 1, 512>}, {pipeline_mode = #tpu.pipeline_mode<synchronous>, transform_indices = @transform_3, window_bounds = array<i64: 1, 512>}, {pipeline_mode = #tpu.pipeline_mode<synchronous>, transform_indices = @transform_4, window_bounds = array<i64: 1, 1>}, {transform_indices = @transform_5, window_bounds = array<i64: 1, 16>}]} {
    %c0 = arith.constant 0 : index
    %c0_0 = arith.constant 0 : index
    %0 = vector.load %arg1[%c0, %c0_0] : memref<16x128xbf16, #tpu.memory_space<vmem>>, vector<16x128xbf16>
    %c0_1 = arith.constant 0 : index
    %c0_2 = arith.constant 0 : index
    %1 = vector.load %arg2[%c0_1, %c0_2] : memref<128x512xbf16, #tpu.memory_space<vmem>>, vector<128x512xbf16>
    %cst = arith.constant dense<0.000000e+00> : vector<16x512xf32>
    %2 = tpu.matmul %0, %1, %cst {dimension_numbers = #tpu.dot_dimension_numbers<[1], [0], [0], [1], [0, 0, 1, 1], [], []>} : vector<16x128xbf16>, vector<128x512xbf16>, vector<16x512xf32> -> vector<16x512xf32>
    %c0_3 = arith.constant 0 : index
    %c0_4 = arith.constant 0 : index
    %3 = vector.load %arg3[%c0_3, %c0_4] : memref<1x512xf32, #tpu.memory_space<vmem>>, vector<1x512xf32>
    %4 = vector.broadcast %3 : vector<1x512xf32> to vector<16x512xf32>
    %5 = arith.addf %2, %4 : vector<16x512xf32>
    %cst_5 = arith.constant 0.000000e+00 : f32
    %6 = vector.broadcast %cst_5 : f32 to vector<16x512xf32>
    %7 = arith.maximumf %5, %6 : vector<16x512xf32>
    %c0_6 = arith.constant 0 : index
    %c0_7 = arith.constant 0 : index
    %8 = vector.load %arg4[%c0_6, %c0_7] : memref<1x512xf32, #tpu.memory_space<vmem>>, vector<1x512xf32>
    %9 = vector.broadcast %8 : vector<1x512xf32> to vector<16x512xf32>
    %10 = arith.mulf %7, %9 : vector<16x512xf32>
    %cst_8 = arith.constant dense<0.000000e+00> : vector<16xf32>
    %11 = vector.multi_reduction <add>, %10, %cst_8 [1] : vector<16x512xf32> to vector<16xf32>
    %12 = vector.shape_cast %11 : vector<16xf32> to vector<16x1xf32>
    %c0_9 = arith.constant 0 : index
    %c0_10 = arith.constant 0 : index
    %13 = vector.load %arg5[%c0_9, %c0_10] : memref<1x1xf32, #tpu.memory_space<vmem>>, vector<1x1xf32>
    %14 = vector.broadcast %13 : vector<1x1xf32> to vector<16x1xf32>
    %15 = arith.addf %12, %14 : vector<16x1xf32>
    %16 = vector.shape_cast %15 : vector<16x1xf32> to vector<1x16xf32>
    %c0_11 = arith.constant 0 : index
    %c0_12 = arith.constant 0 : index
    %17 = vector.load %arg6[%c0_11, %c0_12] : memref<1x16xf32, #tpu.memory_space<vmem>>, vector<1x16xf32>
    tpu.vector_store %arg6[%c0_11, %c0_12], %16 {strides = array<i32>} : memref<1x16xf32, #tpu.memory_space<vmem>>, vector<1x16xf32>,
    return
  }
  func.func @transform_0(%arg0: i32) -> (i32, i32) {
    %c0_i32 = arith.constant 0 : i32
    %c0_i32_0 = arith.constant 0 : i32
    return %arg0, %c0_i32 : i32, i32
  }
  func.func @transform_1(%arg0: i32) -> (i32, i32) {
    %c0_i32 = arith.constant 0 : i32
    %c0_i32_0 = arith.constant 0 : i32
    %c0_i32_1 = arith.constant 0 : i32
    return %c0_i32, %c0_i32_0 : i32, i32
  }
  func.func @transform_2(%arg0: i32) -> (i32, i32) {
    %c0_i32 = arith.constant 0 : i32
    %c0_i32_0 = arith.constant 0 : i32
    %c0_i32_1 = arith.constant 0 : i32
    return %c0_i32, %c0_i32_0 : i32, i32
  }
  func.func @transform_3(%arg0: i32) -> (i32, i32) {
    %c0_i32 = arith.constant 0 : i32
    %c0_i32_0 = arith.constant 0 : i32
    %c0_i32_1 = arith.constant 0 : i32
    return %c0_i32, %c0_i32_0 : i32, i32
  }
  func.func @transform_4(%arg0: i32) -> (i32, i32) {
    %c0_i32 = arith.constant 0 : i32
    %c0_i32_0 = arith.constant 0 : i32
    %c0_i32_1 = arith.constant 0 : i32
    return %c0_i32, %c0_i32_0 : i32, i32
  }
  func.func @transform_5(%arg0: i32) -> (i32, i32) {
    %c0_i32 = arith.constant 0 : i32
    %c0_i32_0 = arith.constant 0 : i32
    return %c0_i32, %arg0 : i32, i32
  }
}

</mosaic_0001>

<bundles_post_ra>
// kernel: tpu_custom_call.1
= control target key start
LH: loop header
LB: loop body
LE: loop exit
PB: predicated region body
PF: predicated region fallthrough
CT: control target
= control target key end

     0   :  { %s713_s0 = inlined_call_operand.hbm [shape: bf16[16,128], index: 0, kind: input, shape index: {}]   ;;  %s714_s1 = inlined_call_operand.hbm [shape: bf16[128,512], index: 1, kind: input, shape index: {}]   ;;  %s715_s2 = inlined_call_operand.vmem [shape: f32[1,512], index: 2, kind: input, shape index: {}]   ;;  %s716_s3 = inlined_call_operand.vmem [shape: f32[1,512], index: 3, kind: input, shape index: {}]   ;;  %s717_s4 = inlined_call_operand.<no memory space> [shape: f32[1,1], index: 4, kind: input, shape index: {}]   ;;  %s718_s5 = inlined_call_operand.hbm [shape: f32[1,16], index: 5, kind: output, shape index: {}]  }
   0x1   :  { %v10_v0 = vstv %s717_s4 }
   0x2   :  { %11 = vst [vmem:[#allocation2] sm:$0x1] %v10_v0 }
   0x3   :  { %12 = vsyncpa [#allocation4], 0 }
   0x4   :  { %13 = vsyncpa [#allocation7], 0 }
   0x5   :  { %14 = vsyncpa [#allocation5], 0  ;;  %s622_s20 = smov [#allocation3]   ;;  %s550_s24 = scalar_lea.hbm %s713_s0, 128 }
   0x6   :  { %s20_s21 = sshll.u32 %s622_s20, 4  ;;  %p551_p0 = scmp.ne.s32.totalorder %s713_s0, %s550_s24  ;;  %s21_s21 = int_to_ptr.vmem [resolvable:$true] %s20_s21 }
   0x7   :  { %p554_p1 = scmp.lt.u32.totalorder %s550_s24, %s713_s0 }
   0x9   :  { %p556_p2 = pnand %p554_p1, %p551_p0 }
   0xb   :  { %559 = shalt.err (!%p556_p2)
}
   0xc   :  { %s560_s4 = scalar_lea.vmem %s21_s21, 128  ;;  %p565_p4 = scmp.lt.s32.totalorder %s21_s21, %s21_s21 }
   0xd   :  { %p561_p3 = scmp.ne.s32.totalorder %s21_s21, %s560_s4  ;;  %p566_p5 = scmp.lt.s32.totalorder %s560_s4, %s560_s4 }
   0xf   :  { %p567_p6 = por %p566_p5, %p565_p4 }
  0x11   :  { %p568_p7 = pnand %p567_p6, %p561_p3 }
  0x13   :  { %571 = shalt.err (!%p568_p7)
}
  0x14   :  { %s623_s29 = smov 64   ;;  %s624_s30 = smov 4  }
  0x15   :  { %26 = dma.hbm_to_vmem [thread:$0]  %s713_s0, 128, %s21_s21, [#allocation4], %s623_s29, %s623_s29, %s624_s30  }
  0x16   :  { %s625_s8 = smov [#allocation6]   ;;  %s572_s12 = scalar_lea.hbm %s714_s1, 4096 }
  0x17   :  { %s32_s9 = sshll.u32 %s625_s8, 4  ;;  %p573_p8 = scmp.ne.s32.totalorder %s714_s1, %s572_s12  ;;  %s33_s9 = int_to_ptr.vmem [resolvable:$true] %s32_s9 }
  0x18   :  { %p576_p9 = scmp.lt.u32.totalorder %s572_s12, %s714_s1 }
  0x1a   :  { %p578_p10 = pnand %p576_p9, %p573_p8 }
  0x1c   :  { %581 = shalt.err (!%p578_p10)
}
  0x1d   :  { %s582_s17 = scalar_lea.vmem %s33_s9, 4096  ;;  %p587_p12 = scmp.lt.s32.totalorder %s33_s9, %s33_s9 }
  0x1e   :  { %p583_p11 = scmp.ne.s32.totalorder %s33_s9, %s582_s17  ;;  %p588_p13 = scmp.lt.s32.totalorder %s582_s17, %s582_s17 }
  0x20   :  { %p589_p0 = por %p588_p13, %p587_p12 }
  0x22   :  { %p590_p1 = pnand %p589_p0, %p583_p11 }
  0x24   :  { %593 = shalt.err (!%p590_p1)
}
  0x25   :  { %s626_s0 = smov 256   ;;  %s627_s18 = smov 16  }
  0x26   :  { %38 = dma.hbm_to_vmem [thread:$0]  %s714_s1, 4096, %s33_s9, [#allocation7], %s626_s0, %s626_s0, %s627_s18  }
  0x27   :  { %616 = dma.done.wait [#allocation4], 128  }
  0x28   :  { %617 = vsyncadd [#allocation4], 4294967168 }
  0x29   :  { %618 = dma.done.wait [#allocation7], 4096  }
  0x2a   :  { %619 = vsyncadd [#allocation7], 4294963200  ;;  %v628_v1 = vmov 0   ;;  %v501_v2 = vld [vmem:[#allocation6 + $0x4] ss:$16 sps:$4 sm:$0xff]   ;;  %v549_v34 = vld [vmem:[#allocation3] sm:$0xff]   ;;  %v88_v35 = vlaneseq }
  0x2b   :  { %306 = vmatprep.mubr.bf16.mxu0 %v628_v1  ;;  %349 = vmatprep.mubr.bf16.mxu1 %v628_v1  ;;  %v503_v3 = vld [vmem:[#allocation6 + $0xc] ss:$16 sps:$4 sm:$0xff]   ;;  %v505_v4 = vld [vmem:[#allocation6] ss:$16 sps:$4 sm:$0xff]   ;;  %v506_v5 = vld [vmem:[#allocation6 + $0x8] ss:$16 sps:$4 sm:$0xff]  }
  0x2c   :  { %499 = vset.pattern.permute.xlu1 %v628_v1  ;;  %500 = vset.pattern.permute.xlu0 %v628_v1  ;;  %v507_v6 = vld [vmem:[#allocation6 + $0x24] ss:$16 sps:$4 sm:$0xff]   ;;  %v509_v7 = vld [vmem:[#allocation6 + $0x2c] ss:$16 sps:$4 sm:$0xff]   ;;  %v511_v8 = vld [vmem:[#allocation6 + $0x20] ss:$16 sps:$4 sm:$0xff]  }
  0x2d   :  { %274 = vmatprep.subr.bf16.mxu0 %v501_v2  ;;  %317 = vmatprep.subr.bf16.mxu1 %v503_v3  ;;  %v512_v9 = vld [vmem:[#allocation6 + $0x28] ss:$16 sps:$4 sm:$0xff]   ;;  %v513_v10 = vld [vmem:[#allocation6 + $0x44] ss:$16 sps:$4 sm:$0xff]   ;;  %v515_v11 = vld [vmem:[#allocation6 + $0x4c] ss:$16 sps:$4 sm:$0xff]  }
  0x2e   :  { %275 = vmatpush1.bf16.msra.mxu0 %v505_v4  ;;  %318 = vmatpush1.bf16.msra.mxu1 %v506_v5  ;;  %v517_v12 = vld [vmem:[#allocation6 + $0x40] ss:$16 sps:$4 sm:$0xff]   ;;  %v518_v13 = vld [vmem:[#allocation6 + $0x48] ss:$16 sps:$4 sm:$0xff]   ;;  %v519_v14 = vld [vmem:[#allocation6 + $0x64] ss:$16 sps:$4 sm:$0xff]  }
  0x2f   :  { %276 = vmatprep.subr.bf16.mxu0 %v507_v6  ;;  %319 = vmatprep.subr.bf16.mxu1 %v509_v7  ;;  %v521_v15 = vld [vmem:[#allocation6 + $0x6c] ss:$16 sps:$4 sm:$0xff]   ;;  %v523_v16 = vld [vmem:[#allocation6 + $0x60] ss:$16 sps:$4 sm:$0xff]   ;;  %v524_v17 = vld [vmem:[#allocation6 + $0x68] ss:$16 sps:$4 sm:$0xff]  }
  0x30   :  { %v525_v18 = vld [vmem:[#allocation6 + $0x84] ss:$16 sps:$4 sm:$0xff]   ;;  %v527_v19 = vld [vmem:[#allocation6 + $0x8c] ss:$16 sps:$4 sm:$0xff]   ;;  %v529_v20 = vld [vmem:[#allocation6 + $0x80] ss:$16 sps:$4 sm:$0xff]  }
  0x31   :  { %v530_v21 = vld [vmem:[#allocation6 + $0x88] ss:$16 sps:$4 sm:$0xff]   ;;  %v531_v22 = vld [vmem:[#allocation6 + $0xa4] ss:$16 sps:$4 sm:$0xff]   ;;  %v533_v23 = vld [vmem:[#allocation6 + $0xac] ss:$16 sps:$4 sm:$0xff]  }
  0x32   :  { %277 = vmatpush1.bf16.msra.mxu0 %v511_v8  ;;  %320 = vmatpush1.bf16.msra.mxu1 %v512_v9  ;;  %v535_v24 = vld [vmem:[#allocation6 + $0xa0] ss:$16 sps:$4 sm:$0xff]   ;;  %v536_v25 = vld [vmem:[#allocation6 + $0xa8] ss:$16 sps:$4 sm:$0xff]   ;;  %v537_v26 = vld [vmem:[#allocation6 + $0xc4] ss:$16 sps:$4 sm:$0xff]  }
  0x33   :  { %278 = vmatprep.subr.bf16.mxu0 %v513_v10  ;;  %321 = vmatprep.subr.bf16.mxu1 %v515_v11  ;;  %v539_v27 = vld [vmem:[#allocation6 + $0xcc] ss:$16 sps:$4 sm:$0xff]   ;;  %v541_v28 = vld [vmem:[#allocation6 + $0xc0] ss:$16 sps:$4 sm:$0xff]   ;;  %v542_v29 = vld [vmem:[#allocation6 + $0xc8] ss:$16 sps:$4 sm:$0xff]  }
  0x34   :  { %v543_v30 = vld [vmem:[#allocation6 + $0xe4] ss:$16 sps:$4 sm:$0xff]   ;;  %v545_v31 = vld [vmem:[#allocation6 + $0xec] ss:$16 sps:$4 sm:$0xff]   ;;  %v547_v32 = vld [vmem:[#allocation6 + $0xe0] ss:$16 sps:$4 sm:$0xff]  }
  0x35   :  { %v548_v33 = vld [vmem:[#allocation6 + $0xe8] ss:$16 sps:$4 sm:$0xff]   ;;  %v687_v36 = vshrl.u32 %v88_v35, 7  ;;  %vm436_vm0 = vcmask 130112   ;;  %vm439_vm1 = vcmask 122880  }
  0x36   :  { %279 = vmatpush1.bf16.msra.mxu0 %v517_v12  ;;  %322 = vmatpush1.bf16.msra.mxu1 %v518_v13  ;;  %v86_v39 = vld [vmem:[%s715_s2] sm:$0xf]  ;;  %s629_s2 = smov [#allocation8]  }
  0x37   :  { %280 = vmatprep.subr.bf16.mxu0 %v519_v14  ;;  %323 = vmatprep.subr.bf16.mxu1 %v521_v15  ;;  %v90_v37 = vsub.s32 0, %v687_v36  ;;  %v98_v38 = vsub.s32 2, %v687_v36  ;;  %v94_v40 = vsub.s32 1, %v687_v36  ;;  %v102_v41 = vsub.s32 3, %v687_v36  ;;  %v368_v44 = vld [vmem:[%s716_s3] sm:$0xf] }
  0x38   :  { %s447_s3 = sshll.u32 %s629_s2, 4  ;;  %s448_s3 = int_to_ptr.vmem [resolvable:$true] %s447_s3 }
  0x39   :  { %v91_v42 = vrot.slane %v86_v39, %v90_v37  ;;  %v99_v43 = vrot.slane %v86_v39, %v98_v38  ;;  %v95_v45 = vrot.slane %v86_v39, %v94_v40  ;;  %v103_v46 = vrot.slane %v86_v39, %v102_v41  ;;  %s594_s24 = scalar_lea.vmem %s448_s3, 16  ;;  %s598_s25 = scalar_lea.vmem %s448_s3, 32 }
  0x3a   :  { %281 = vmatpush1.bf16.msra.mxu0 %v523_v16  ;;  %324 = vmatpush1.bf16.msra.mxu1 %v524_v17  ;;  %v373_v50 = vrot.slane %v368_v44, %v90_v37  ;;  %v381_v54 = vrot.slane %v368_v44, %v98_v38  ;;  %v377_v56 = vrot.slane %v368_v44, %v94_v40  ;;  %p595_p2 = scmp.ne.s32.totalorder %s448_s3, %s594_s24  ;;  %p599_p3 = scmp.lt.s32.totalorder %s448_s3, %s448_s3 }
  0x3b   :  { %282 = vmatprep.subr.bf16.mxu0 %v525_v18  ;;  %325 = vmatprep.subr.bf16.mxu1 %v527_v19  ;;  %v385_v8 = vrot.slane %v368_v44, %v102_v41  ;;  %p600_p4 = scmp.lt.s32.totalorder %s598_s25, %s594_s24 }
  0x3d   :  { %p601_p5 = por %p600_p4, %p599_p3 }
  0x3e   :  { %283 = vmatpush1.bf16.msra.mxu0 %v529_v20  ;;  %326 = vmatpush1.bf16.msra.mxu1 %v530_v21 }
  0x3f   :  { %284 = vmatprep.subr.bf16.mxu0 %v531_v22  ;;  %327 = vmatprep.subr.bf16.mxu1 %v533_v23  ;;  %p602_p6 = pnand %p601_p5, %p595_p2 }
  0x42   :  { %285 = vmatpush1.bf16.msra.mxu0 %v535_v24  ;;  %328 = vmatpush1.bf16.msra.mxu1 %v536_v25  ;;  %v490_v25 = vld [vmem:[#allocation2] ss:$0 sm:$0xff] }
  0x43   :  { %286 = vmatprep.subr.bf16.mxu0 %v537_v26  ;;  %329 = vmatprep.subr.bf16.mxu1 %v539_v27 }
  0x46   :  { %287 = vmatpush1.bf16.msra.mxu0 %v541_v28  ;;  %330 = vmatpush1.bf16.msra.mxu1 %v542_v29 }
  0x47   :  { %288 = vmatprep.subr.bf16.mxu0 %v543_v30  ;;  %331 = vmatprep.subr.bf16.mxu1 %v545_v31  ;;  %v426_v30 = vand.u32 127, %v88_v35 }
  0x49   :  { %v431_v31 = vadd.s32 4294967288, %v426_v30 }
  0x4a   :  { %289 = vmatpush1.bf16.msra.mxu0 %v547_v32  ;;  %332 = vmatpush1.bf16.msra.mxu1 %v548_v33  ;;  %v429_v33 = vsub.s32 %v426_v30, %v687_v36 }
  0x4d   :  { %307 = vmatmul.mubr.bf16.vlgmr.msra.gmra.mrb[0].mxu0 %v549_v34  ;;  %350 = vmatmul.mubr.bf16.vlgmr.msra.gmra.mrb[0].mxu1 %v549_v34  ;;  %v434_v34 = vsub.s32 %v431_v31, %v687_v36 }
 0x120   :  { %v308_v47 = vpop.f32.mrb[0].mxu0  ;;  %v351_v48 = vpop.f32.mrb[0].mxu1 }
 0x121   :  { %v309_v49 = vadd.f32 %v308_v47, %v91_v42  ;;  %v352_v51 = vadd.f32 %v351_v48, %v99_v43  ;;  %v310_v52 = vpop.f32.mrb[1].mxu0  ;;  %v353_v53 = vpop.f32.mrb[1].mxu1 }
 0x122   :  { %v311_v55 = vadd.f32 %v310_v52, %v95_v45  ;;  %v354_v57 = vadd.f32 %v353_v53, %v103_v46  ;;  %v312_v58 = vpop.f32.mrb[2].mxu0  ;;  %v355_v59 = vpop.f32.mrb[2].mxu1 }
 0x123   :  { %v360_v60 = vmax.f32 %v309_v49, 0.0  ;;  %v362_v61 = vmax.f32 %v352_v51, 0.0  ;;  %v313_v62 = vadd.f32 %v312_v58, %v91_v42  ;;  %v356_v63 = vadd.f32 %v355_v59, %v99_v43  ;;  %v314_v0 = vpop.f32.mrb[3].mxu0  ;;  %v357_v1 = vpop.f32.mrb[3].mxu1 }
 0x124   :  { %v361_v2 = vmax.f32 %v311_v55, 0.0  ;;  %v315_v3 = vadd.f32 %v314_v0, %v95_v45  ;;  %v358_v4 = vadd.f32 %v357_v1, %v103_v46  ;;  %v363_v6 = vmax.f32 %v354_v57, 0.0 }
 0x125   :  { %v390_v5 = vmul.f32 %v373_v50, %v360_v60  ;;  %v364_v7 = vmax.f32 %v313_v62, 0.0  ;;  %v392_v9 = vmul.f32 %v381_v54, %v362_v61  ;;  %v366_v11 = vmax.f32 %v356_v63, 0.0 }
 0x126   :  { %v391_v10 = vmul.f32 %v377_v56, %v361_v2  ;;  %v365_v12 = vmax.f32 %v315_v3, 0.0  ;;  %v367_v15 = vmax.f32 %v358_v4, 0.0  ;;  %v393_v19 = vmul.f32 %v385_v8, %v363_v6 }
 0x127   :  { %v394_v13 = vmul.f32 %v373_v50, %v364_v7  ;;  %v396_v17 = vmul.f32 %v381_v54, %v366_v11 }
 0x128   :  { %v395_v14 = vmul.f32 %v377_v56, %v365_v12  ;;  %v398_v16 = vadd.f32 %v391_v10, %v390_v5  ;;  %v397_v21 = vmul.f32 %v385_v8, %v367_v15 }
 0x12a   :  { %v403_v18 = vadd.f32 %v395_v14, %v394_v13  ;;  %v399_v20 = vadd.f32 %v398_v16, %v392_v9 }
 0x12c   :  { %v400_v22 = vadd.f32 %v399_v20, %v393_v19  ;;  %v404_v23 = vadd.f32 %v403_v18, %v396_v17 }
 0x12e   :  { %401 = vadd.xlane.f32.xlu0 %v400_v22  ;;  %v405_v24 = vadd.f32 %v404_v23, %v397_v21 }
 0x132   :  { %406 = vadd.xlane.f32.xlu0 %v405_v24 }
 0x1bb   :  { %v402_v26 = vpop.xlane.xlu0 %401 }
 0x1bc   :  { %v415_v27 = vadd.f32 %v490_v25, %v402_v26 }
 0x1be   :  { %420 = vperm.xlu1 %499, %v415_v27  }
 0x1bf   :  { %v407_v28 = vpop.xlane.xlu0 %406 }
 0x1c0   :  { %v416_v29 = vadd.f32 %v490_v25, %v407_v28 }
 0x1c2   :  { %423 = vperm.xlu1 %499, %v416_v29  }
 0x23d   :  { %v421_v32 = vpop.permute.xlu1 %420 }
 0x23e   :  { %v430_v38 = vrot.slane %v421_v32, %v429_v33 }
 0x241   :  { %v424_v37 = vpop.permute.xlu1 %423 }
 0x242   :  { %v435_v39 = vrot.slane %v424_v37, %v434_v34 }
 0x244   :  { %v437_v40 = vsel %vm436_vm0, %v435_v39, %v430_v38 }
 0x245   :  { %440 = vst.msk [vmem:[#allocation8] sm:$0x1] %vm439_vm1, %v437_v40 }
 0x246   :  { %605 = shalt.err (!%p602_p6)
}
 0x247   :  { %s606_s28 = scalar_lea.hbm %s718_s5, 16 }
 0x248   :  { %p607_p7 = scmp.ne.s32.totalorder %s718_s5, %s606_s28  ;;  %p610_p8 = scmp.lt.u32.totalorder %s606_s28, %s718_s5 }
 0x24a   :  { %p612_p9 = pnand %p610_p8, %p607_p7 }
 0x24c   :  { %615 = shalt.err (!%p612_p9)
}
 0x24d   :  { %450 = dma.vmem_to_hbm [thread:$0]  %s448_s3, 16, %s718_s5, [#allocation5]  }
 0x24e   :  { %620 = dma.done.wait [#allocation5], 16  }
 0x24f   :  { %621 = vsyncadd [#allocation5], 4294967280 }
 0x250   :  { %454 = vsyncpa [#allocation4], 1 }
 0x251   :  { %455 = vsyncpa [#allocation7], 1 }
 0x252   :  { %456 = vsyncpa [#allocation5], 1 }

</bundles_post_ra>
